<compile_context>
chip_gen: v6e
topology: v6e:2x2x1
jax: 0.10.0
libtpu: 0.0.40
codegen_flags: <defaults>
</compile_context>

<pallas_src>
import jax
import jax.numpy as jnp
from jax.experimental import pallas as pl
from jax.experimental.pallas import tpu as pltpu

IN_DIM = 28 * 28      # 784 (multiple of 8; used as full-extent lane dim)
HID = 256
OUT = 10
OUT_PAD = 128         # lane-dense output slab width
N_ITERS = 4


def _round_up(n, m):
    return ((n + m - 1) // m) * m


def _choose_tile(B, tb):
    """Pick a batch tile: multiple of 16 (bf16 sublanes), >=2 tiles when possible."""
    tb = max(16, _round_up(tb, 16))
    if B >= 2 * tb:
        return tb
    # Split small/medium batches into ~two tiles so a dual-TensorCore chip
    # (v7x) can shard the "parallel" batch axis instead of idling one core.
    half = _round_up(-(-B // 2), 16)
    return max(16, min(tb, half))


def resdd_kernel(x_ref, w0t_ref, wdt_ref, w2t_ref, o_ref):
    # fc0: bf16 x bf16 -> f32 accumulation on the MXU (x_ref is already bf16).
    x = jnp.dot(x_ref[...], w0t_ref[...],
                preferred_element_type=jnp.float32)          # (TB, 256) f32
    # Hoist residual algebra: g*c + g == g*(c+1).
    c1 = x + 1.0
    for _ in range(N_ITERS):
        g = jnp.dot(x.astype(jnp.bfloat16), wdt_ref[...],
                    preferred_element_type=jnp.float32)
        x = g * c1                                           # f32 VPU math (v5e-safe)
    # fc2 into a lane-dense (TB, 128) bf16 slab; cols 10..127 are zero weights.
    o_ref[...] = jnp.dot(x.astype(jnp.bfloat16), w2t_ref[...],
                         preferred_element_type=jnp.float32).astype(o_ref.dtype)


def resdd_forward(x, w0, wd, w2, *, tb=1024):
    """x: (B, 784) f32. w0:(256,784), wd:(256,256), w2:(10,256) in PyTorch Linear layout."""
    B = x.shape[0]
    TB = _choose_tile(B, tb)
    Bp = _round_up(B, TB)
    n_tiles = Bp // TB

    # Host-side prep (pure glue): single bf16 copy of x padded only along batch
    # (K stays at 784 -> no 12.5% zero-column traffic, no extra f32 roundtrip).
    xp = jnp.zeros((Bp, IN_DIM), jnp.bfloat16).at[:B, :].set(x.astype(jnp.bfloat16))
    w0t = w0.T.astype(jnp.bfloat16)                                 # (784, 256)
    wdt = wd.T.astype(jnp.bfloat16)                                 # (256, 256)
    w2t = jnp.zeros((HID, OUT_PAD), jnp.bfloat16).at[:, :OUT].set(
        w2.T.astype(jnp.bfloat16))                                  # (256, 128)

    flops = 2 * Bp * (IN_DIM * HID + N_ITERS * HID * HID + HID * OUT_PAD)
    bytes_accessed = (xp.size + w0t.size + wdt.size + w2t.size + Bp * OUT_PAD) * 2

    out = pl.pallas_call(
        resdd_kernel,
        out_shape=jax.ShapeDtypeStruct((Bp, OUT_PAD), jnp.bfloat16),
        grid_spec=pltpu.PrefetchScalarGridSpec(
            num_scalar_prefetch=0,
            grid=(n_tiles,),
            in_specs=[
                pl.BlockSpec((TB, IN_DIM), lambda i: (i, 0)),      # x tile (bf16)
                pl.BlockSpec((IN_DIM, HID), lambda i: (0, 0)),     # w0t (VMEM-resident)
                pl.BlockSpec((HID, HID), lambda i: (0, 0)),        # wdt (VMEM-resident)
                pl.BlockSpec((HID, OUT_PAD), lambda i: (0, 0)),    # w2t (VMEM-resident)
            ],
            out_specs=pl.BlockSpec((TB, OUT_PAD), lambda i: (i, 0)),
        ),
        compiler_params=pltpu.CompilerParams(
            dimension_semantics=("parallel",)),                     # dual-TC sharding
        cost_estimate=pl.CostEstimate(
            flops=flops, transcendentals=0, bytes_accessed=bytes_accessed),
    )(xp, w0t, wdt, w2t)

    # Slice off batch padding and the zero-weight lanes; return f32 like PyTorch.
    return out[:B, :OUT].astype(jnp.float32)


def resdd_reference(x, w0, wd, w2):
    x = x @ w0.T
    c = x
    for _ in range(N_ITERS):
        g = x @ wd.T
        x = g * c + g
    return x @ w2.T


def resdd_reference_bf16(x, w0, wd, w2):
    # Same math as the kernel (bf16 operands, f32 accumulation) for a tight check.
    xb = x.astype(jnp.bfloat16)
    w0b, wdb, w2b = (w.T.astype(jnp.bfloat16) for w in (w0, wd, w2))
    h = jnp.dot(xb, w0b, preferred_element_type=jnp.float32)
    c1 = h + 1.0
    for _ in range(N_ITERS):
        g = jnp.dot(h.astype(jnp.bfloat16), wdb, preferred_element_type=jnp.float32)
        h = g * c1
    out = jnp.dot(h.astype(jnp.bfloat16), w2b, preferred_element_type=jnp.float32)
    return out.astype(jnp.bfloat16).astype(jnp.float32)   # kernel stores bf16 slab


if __name__ == "__main__":
    key = jax.random.PRNGKey(0)
    k_x, k_w0, k_wd, k_w2 = jax.random.split(key, 4)

    B = 16  # small demo batch (exercises 16-row bf16 tiles)
    x = jax.random.normal(k_x, (B, IN_DIM), dtype=jnp.float32)

    # nn.Linear-like uniform(-1/sqrt(fan_in), 1/sqrt(fan_in)) init.
    def init_w(k, out_f, in_f):
        bound = 1.0 / jnp.sqrt(in_f)
        return jax.random.uniform(k, (out_f, in_f), jnp.float32, -bound, bound)

    w0 = init_w(k_w0, HID, IN_DIM)   # fc0.weight: (256, 784)
    wd = init_w(k_wd, HID, HID)      # dd.weight:  (256, 256)
    w2 = init_w(k_w2, OUT, HID)      # fc2.weight: (10, 256)

    out = resdd_forward(x, w0, wd, w2)
    out = jax.block_until_ready(out)
    assert out.shape == (B, OUT)

    # Tight check vs. a bf16-weight reference (same quantization as the kernel).
    ref_bf16 = resdd_reference_bf16(x, w0, wd, w2)
    assert jnp.allclose(out, ref_bf16, rtol=1e-2, atol=1e-2), "mismatch vs bf16 reference"

    # Loose check vs. the exact f32 PyTorch-equivalent math (bf16 loses ~0.4%/matmul).
    ref = resdd_reference(x, w0, wd, w2)
    assert jnp.allclose(out, ref, rtol=5e-2, atol=5e-2), "mismatch vs f32 reference"

    print("KERNEL_OK")
</pallas_src>

<mosaic_0001>
module attributes {stable_mosaic.version = 11 : i64} {
  func.func @resdd_kernel(%arg0: i32, %arg1: memref<16x784xbf16, #tpu.memory_space<vmem>>, %arg2: memref<784x256xbf16, #tpu.memory_space<vmem>>, %arg3: memref<256x256xbf16, #tpu.memory_space<vmem>>, %arg4: memref<256x128xbf16, #tpu.memory_space<vmem>>, %arg5: memref<16x128xbf16, #tpu.memory_space<vmem>>) attributes {dimension_semantics = [#tpu.dimension_semantics<parallel>], iteration_bounds = array<i64: 1>, scalar_prefetch = 0 : i64, scratch_operands = 0 : i64, tpu.core_type = #tpu.core_type<tc>, window_params = [{transform_indices = @transform_0, window_bounds = array<i64: 16, 784>}, {pipeline_mode = #tpu.pipeline_mode<synchronous>, transform_indices = @transform_1, window_bounds = array<i64: 784, 256>}, {pipeline_mode = #tpu.pipeline_mode<synchronous>, transform_indices = @transform_2, window_bounds = array<i64: 256, 256>}, {pipeline_mode = #tpu.pipeline_mode<synchronous>, transform_indices = @transform_3, window_bounds = array<i64: 256, 128>}, {transform_indices = @transform_4, window_bounds = array<i64: 16, 128>}]} {
    %c0 = arith.constant 0 : index
    %c0_0 = arith.constant 0 : index
    %0 = vector.load %arg1[%c0, %c0_0] : memref<16x784xbf16, #tpu.memory_space<vmem>>, vector<16x784xbf16>
    %c0_1 = arith.constant 0 : index
    %c0_2 = arith.constant 0 : index
    %1 = vector.load %arg2[%c0_1, %c0_2] : memref<784x256xbf16, #tpu.memory_space<vmem>>, vector<784x256xbf16>
    %cst = arith.constant dense<0.000000e+00> : vector<16x256xf32>
    %2 = tpu.matmul %0, %1, %cst {dimension_numbers = #tpu.dot_dimension_numbers<[1], [0], [0], [1], [0, 0, 1, 1], [], []>} : vector<16x784xbf16>, vector<784x256xbf16>, vector<16x256xf32> -> vector<16x256xf32>
    %cst_3 = arith.constant 1.000000e+00 : f32
    %3 = vector.broadcast %cst_3 : f32 to vector<16x256xf32>
    %4 = arith.addf %2, %3 : vector<16x256xf32>
    %5 = arith.truncf %2 : vector<16x256xf32> to vector<16x256xbf16>
    %c0_4 = arith.constant 0 : index
    %c0_5 = arith.constant 0 : index
    %6 = vector.load %arg3[%c0_4, %c0_5] : memref<256x256xbf16, #tpu.memory_space<vmem>>, vector<256x256xbf16>
    %cst_6 = arith.constant dense<0.000000e+00> : vector<16x256xf32>
    %7 = tpu.matmul %5, %6, %cst_6 {dimension_numbers = #tpu.dot_dimension_numbers<[1], [0], [0], [1], [0, 0, 1, 1], [], []>} : vector<16x256xbf16>, vector<256x256xbf16>, vector<16x256xf32> -> vector<16x256xf32>
    %8 = arith.mulf %7, %4 : vector<16x256xf32>
    %9 = arith.truncf %8 : vector<16x256xf32> to vector<16x256xbf16>
    %c0_7 = arith.constant 0 : index
    %c0_8 = arith.constant 0 : index
    %10 = vector.load %arg3[%c0_7, %c0_8] : memref<256x256xbf16, #tpu.memory_space<vmem>>, vector<256x256xbf16>
    %cst_9 = arith.constant dense<0.000000e+00> : vector<16x256xf32>
    %11 = tpu.matmul %9, %10, %cst_9 {dimension_numbers = #tpu.dot_dimension_numbers<[1], [0], [0], [1], [0, 0, 1, 1], [], []>} : vector<16x256xbf16>, vector<256x256xbf16>, vector<16x256xf32> -> vector<16x256xf32>
    %12 = arith.mulf %11, %4 : vector<16x256xf32>
    %13 = arith.truncf %12 : vector<16x256xf32> to vector<16x256xbf16>
    %c0_10 = arith.constant 0 : index
    %c0_11 = arith.constant 0 : index
    %14 = vector.load %arg3[%c0_10, %c0_11] : memref<256x256xbf16, #tpu.memory_space<vmem>>, vector<256x256xbf16>
    %cst_12 = arith.constant dense<0.000000e+00> : vector<16x256xf32>
    %15 = tpu.matmul %13, %14, %cst_12 {dimension_numbers = #tpu.dot_dimension_numbers<[1], [0], [0], [1], [0, 0, 1, 1], [], []>} : vector<16x256xbf16>, vector<256x256xbf16>, vector<16x256xf32> -> vector<16x256xf32>
    %16 = arith.mulf %15, %4 : vector<16x256xf32>
    %17 = arith.truncf %16 : vector<16x256xf32> to vector<16x256xbf16>
    %c0_13 = arith.constant 0 : index
    %c0_14 = arith.constant 0 : index
    %18 = vector.load %arg3[%c0_13, %c0_14] : memref<256x256xbf16, #tpu.memory_space<vmem>>, vector<256x256xbf16>
    %cst_15 = arith.constant dense<0.000000e+00> : vector<16x256xf32>
    %19 = tpu.matmul %17, %18, %cst_15 {dimension_numbers = #tpu.dot_dimension_numbers<[1], [0], [0], [1], [0, 0, 1, 1], [], []>} : vector<16x256xbf16>, vector<256x256xbf16>, vector<16x256xf32> -> vector<16x256xf32>
    %20 = arith.mulf %19, %4 : vector<16x256xf32>
    %21 = arith.truncf %20 : vector<16x256xf32> to vector<16x256xbf16>
    %c0_16 = arith.constant 0 : index
    %c0_17 = arith.constant 0 : index
    %22 = vector.load %arg4[%c0_16, %c0_17] : memref<256x128xbf16, #tpu.memory_space<vmem>>, vector<256x128xbf16>
    %cst_18 = arith.constant dense<0.000000e+00> : vector<16x128xf32>
    %23 = tpu.matmul %21, %22, %cst_18 {dimension_numbers = #tpu.dot_dimension_numbers<[1], [0], [0], [1], [0, 0, 1, 1], [], []>} : vector<16x256xbf16>, vector<256x128xbf16>, vector<16x128xf32> -> vector<16x128xf32>
    %24 = arith.truncf %23 : vector<16x128xf32> to vector<16x128xbf16>
    %c0_19 = arith.constant 0 : index
    %c0_20 = arith.constant 0 : index
    %25 = vector.load %arg5[%c0_19, %c0_20] : memref<16x128xbf16, #tpu.memory_space<vmem>>, vector<16x128xbf16>
    tpu.vector_store %arg5[%c0_19, %c0_20], %24 {strides = array<i32>} : memref<16x128xbf16, #tpu.memory_space<vmem>>, vector<16x128xbf16>,
    return
  }
  func.func @transform_0(%arg0: i32) -> (i32, i32) {
    %c0_i32 = arith.constant 0 : i32
    %c0_i32_0 = arith.constant 0 : i32
    return %arg0, %c0_i32 : i32, i32
  }
  func.func @transform_1(%arg0: i32) -> (i32, i32) {
    %c0_i32 = arith.constant 0 : i32
    %c0_i32_0 = arith.constant 0 : i32
    %c0_i32_1 = arith.constant 0 : i32
    return %c0_i32, %c0_i32_0 : i32, i32
  }
  func.func @transform_2(%arg0: i32) -> (i32, i32) {
    %c0_i32 = arith.constant 0 : i32
    %c0_i32_0 = arith.constant 0 : i32
    %c0_i32_1 = arith.constant 0 : i32
    return %c0_i32, %c0_i32_0 : i32, i32
  }
  func.func @transform_3(%arg0: i32) -> (i32, i32) {
    %c0_i32 = arith.constant 0 : i32
    %c0_i32_0 = arith.constant 0 : i32
    %c0_i32_1 = arith.constant 0 : i32
    return %c0_i32, %c0_i32_0 : i32, i32
  }
  func.func @transform_4(%arg0: i32) -> (i32, i32) {
    %c0_i32 = arith.constant 0 : i32
    %c0_i32_0 = arith.constant 0 : i32
    return %arg0, %c0_i32 : i32, i32
  }
}

</mosaic_0001>

<bundles_post_ra>
// kernel: tpu_custom_call.1
= control target key start
LH: loop header
LB: loop body
LE: loop exit
PB: predicated region body
PF: predicated region fallthrough
CT: control target
= control target key end

     0   :  { %9 = vsyncpa [#allocation3], 0  ;;  %s2279_s0 = inlined_call_operand.hbm [shape: bf16[16,784], index: 0, kind: input, shape index: {}]   ;;  %s2280_s1 = inlined_call_operand.hbm [shape: bf16[784,256], index: 1, kind: input, shape index: {}]   ;;  %s2281_s2 = inlined_call_operand.hbm [shape: bf16[256,256], index: 2, kind: input, shape index: {}]   ;;  %s2282_s3 = inlined_call_operand.hbm [shape: bf16[256,128], index: 3, kind: input, shape index: {}]   ;;  %s2283_s4 = inlined_call_operand.hbm [shape: bf16[16,128], index: 4, kind: output, shape index: {}]  }
   0x1   :  { %10 = vsyncpa [#allocation6], 0 }
   0x2   :  { %11 = vsyncpa [#allocation9], 0 }
   0x3   :  { %12 = vsyncpa [#allocation4], 0  ;;  %s1999_s15 = smov [#allocation5]  }
   0x4   :  { %s30_s16 = sshll.u32 %s1999_s15, 4  ;;  %s31_s16 = int_to_ptr.vmem [resolvable:$true] %s30_s16 }
   0x5   :  { %s1899_s17 = scalar_lea.vmem %s31_s16, 12544  ;;  %p1904_p1 = scmp.lt.s32.totalorder %s31_s16, %s31_s16 }
   0x6   :  { %p1900_p0 = scmp.ne.s32.totalorder %s31_s16, %s1899_s17  ;;  %p1905_p2 = scmp.lt.s32.totalorder %s1899_s17, %s1899_s17 }
   0x8   :  { %p1906_p3 = por %p1905_p2, %p1904_p1 }
   0xa   :  { %p1907_p4 = pnand %p1906_p3, %p1900_p0 }
   0xc   :  { %1910 = shalt.err (!%p1907_p4)
}
   0xd   :  { %s2000_s18 = smov 128   ;;  %s2001_s19 = smov 8  }
   0xe   :  { %36 = dma.hbm_to_vmem [thread:$0]  %s2280_s1, 12544, %s31_s16, [#allocation6], %s2000_s18, %s2000_s18, %s2001_s19  }
   0xf   :  { %s2002_s22 = smov [#allocation2]  }
  0x10   :  { %s18_s23 = sshll.u32 %s2002_s22, 4  ;;  %s19_s23 = int_to_ptr.vmem [resolvable:$true] %s18_s23 }
  0x11   :  { %s1919_s24 = scalar_lea.vmem %s19_s23, 896  ;;  %p1924_p6 = scmp.lt.s32.totalorder %s19_s23, %s19_s23 }
  0x12   :  { %p1920_p5 = scmp.ne.s32.totalorder %s19_s23, %s1919_s24  ;;  %p1925_p7 = scmp.lt.s32.totalorder %s1919_s24, %s1919_s24 }
  0x14   :  { %p1926_p8 = por %p1925_p7, %p1924_p6 }
  0x16   :  { %p1927_p9 = pnand %p1926_p8, %p1920_p5 }
  0x18   :  { %1930 = shalt.err (!%p1927_p9)
}
  0x19   :  { %s2003_s25 = smov 448   ;;  %s2004_s26 = smov 28  }
  0x1a   :  { %24 = dma.hbm_to_vmem [thread:$0]  %s2279_s0, 896, %s19_s23, [#allocation3], %s2003_s25, %s2003_s25, %s2004_s26  }
  0x1b   :  { %s2005_s29 = smov [#allocation7]   ;;  %s2006_s5 = smov [#allocation8]  }
  0x1c   :  { %s42_s30 = sshll.u32 %s2005_s29, 4  ;;  %s54_s1 = sshll.u32 %s2006_s5, 4  ;;  %s43_s30 = int_to_ptr.vmem [resolvable:$true] %s42_s30  ;;  %s55_s1 = int_to_ptr.vmem [resolvable:$true] %s54_s1 }
  0x1d   :  { %s1939_s6 = scalar_lea.vmem %s43_s30, 4096  ;;  %p1944_p11 = scmp.lt.s32.totalorder %s43_s30, %s43_s30 }
  0x1e   :  { %p1940_p10 = scmp.ne.s32.totalorder %s43_s30, %s1939_s6  ;;  %p1945_p12 = scmp.lt.s32.totalorder %s1939_s6, %s1939_s6 }
  0x20   :  { %p1946_p13 = por %p1945_p12, %p1944_p11 }
  0x22   :  { %p1947_p0 = pnand %p1946_p13, %p1940_p10 }
  0x24   :  { %1950 = shalt.err (!%p1947_p0)
}
  0x25   :  { %48 = dma.hbm_to_vmem [thread:$0]  %s2281_s2, 4096, %s43_s30, [#allocation6], %s2000_s18, %s2000_s18, %s2001_s19  }
  0x26   :  { %s1959_s0 = scalar_lea.vmem %s55_s1, 2048  ;;  %p1964_p2 = scmp.lt.s32.totalorder %s55_s1, %s55_s1 }
  0x27   :  { %p1960_p1 = scmp.ne.s32.totalorder %s55_s1, %s1959_s0  ;;  %p1965_p3 = scmp.lt.s32.totalorder %s1959_s0, %s1959_s0 }
  0x29   :  { %p1966_p4 = por %p1965_p3, %p1964_p2 }
  0x2b   :  { %p1967_p5 = pnand %p1966_p4, %p1960_p1 }
  0x2d   :  { %1970 = shalt.err (!%p1967_p5)
}
  0x2e   :  { %s2007_s9 = smov 64   ;;  %s2008_s10 = smov 4  }
  0x2f   :  { %60 = dma.hbm_to_vmem [thread:$0]  %s2282_s3, 2048, %s55_s1, [#allocation9], %s2007_s9, %s2007_s9, %s2008_s10  }
  0x30   :  { %1991 = dma.done.wait [#allocation3], 896  }
  0x31   :  { %1992 = vsyncadd [#allocation3], 4294966400 }
  0x32   :  { %1993 = dma.done.wait [#allocation6], 16640  }
  0x33   :  { %1994 = vsyncadd [#allocation6], 4294950656 }
  0x34   :  { %1995 = dma.done.wait [#allocation9], 2048  }
  0x35   :  { %1996 = vsyncadd [#allocation9], 4294965248  ;;  %v1670_v0 = vld [vmem:[#allocation5 + $0x74] ss:$8 sps:$4 sm:$0xff]   ;;  %v1674_v2 = vld [vmem:[#allocation5 + $0x70] ss:$8 sps:$4 sm:$0xff]  }
  0x36   :  { %v1672_v1 = vld [vmem:[#allocation5 + $0x174] ss:$8 sps:$4 sm:$0xff]   ;;  %709 = vmatprep.subr.bf16.mxu0 %v1670_v0  ;;  %v1675_v3 = vld [vmem:[#allocation5 + $0x170] ss:$8 sps:$4 sm:$0xff]   ;;  %v1676_v4 = vld [vmem:[#allocation5 + $0x64] ss:$8 sps:$4 sm:$0xff]  }
  0x37   :  { %752 = vmatprep.subr.bf16.mxu1 %v1672_v1  ;;  %710 = vmatpush1.bf16.msra.mxu0 %v1674_v2  ;;  %v1678_v5 = vld [vmem:[#allocation5 + $0x164] ss:$8 sps:$4 sm:$0xff]   ;;  %v1680_v6 = vld [vmem:[#allocation5 + $0x60] ss:$8 sps:$4 sm:$0xff]   ;;  %v1682_v8 = vld [vmem:[#allocation5 + $0x54] ss:$8 sps:$4 sm:$0xff]  }
  0x38   :  { %753 = vmatpush1.bf16.msra.mxu1 %v1675_v3  ;;  %711 = vmatprep.subr.bf16.mxu0 %v1676_v4  ;;  %v1681_v7 = vld [vmem:[#allocation5 + $0x160] ss:$8 sps:$4 sm:$0xff]   ;;  %v1684_v9 = vld [vmem:[#allocation5 + $0x154] ss:$8 sps:$4 sm:$0xff]   ;;  %v1686_v10 = vld [vmem:[#allocation5 + $0x50] ss:$8 sps:$4 sm:$0xff]  }
  0x39   :  { %754 = vmatprep.subr.bf16.mxu1 %v1678_v5  ;;  %v1687_v11 = vld [vmem:[#allocation5 + $0x150] ss:$8 sps:$4 sm:$0xff]   ;;  %v1688_v12 = vld [vmem:[#allocation5 + $0x44] ss:$8 sps:$4 sm:$0xff]   ;;  %v1692_v14 = vld [vmem:[#allocation5 + $0x40] ss:$8 sps:$4 sm:$0xff]  }
  0x3a   :  { %v1690_v13 = vld [vmem:[#allocation5 + $0x144] ss:$8 sps:$4 sm:$0xff]   ;;  %v1693_v15 = vld [vmem:[#allocation5 + $0x140] ss:$8 sps:$4 sm:$0xff]   ;;  %v1694_v16 = vld [vmem:[#allocation5 + $0x34] ss:$8 sps:$4 sm:$0xff]  }
  0x3b   :  { %712 = vmatpush1.bf16.msra.mxu0 %v1680_v6  ;;  %v1696_v17 = vld [vmem:[#allocation5 + $0x134] ss:$8 sps:$4 sm:$0xff]   ;;  %v1698_v18 = vld [vmem:[#allocation5 + $0x30] ss:$8 sps:$4 sm:$0xff]   ;;  %v1700_v20 = vld [vmem:[#allocation5 + $0x24] ss:$8 sps:$4 sm:$0xff]  }
  0x3c   :  { %755 = vmatpush1.bf16.msra.mxu1 %v1681_v7  ;;  %713 = vmatprep.subr.bf16.mxu0 %v1682_v8  ;;  %v1699_v19 = vld [vmem:[#allocation5 + $0x130] ss:$8 sps:$4 sm:$0xff]   ;;  %v1702_v21 = vld [vmem:[#allocation5 + $0x124] ss:$8 sps:$4 sm:$0xff]   ;;  %v1704_v22 = vld [vmem:[#allocation5 + $0x20] ss:$8 sps:$4 sm:$0xff]  }
  0x3d   :  { %756 = vmatprep.subr.bf16.mxu1 %v1684_v9  ;;  %v1705_v23 = vld [vmem:[#allocation5 + $0x120] ss:$8 sps:$4 sm:$0xff]   ;;  %v1706_v24 = vld [vmem:[#allocation5 + $0x14] ss:$8 sps:$4 sm:$0xff]   ;;  %v1710_v26 = vld [vmem:[#allocation5 + $0x10] ss:$8 sps:$4 sm:$0xff]  }
  0x3e   :  { %v1708_v25 = vld [vmem:[#allocation5 + $0x114] ss:$8 sps:$4 sm:$0xff]   ;;  %v1711_v27 = vld [vmem:[#allocation5 + $0x110] ss:$8 sps:$4 sm:$0xff]   ;;  %v1712_v28 = vld [vmem:[#allocation5 + $0x4] ss:$8 sps:$4 sm:$0xff]  }
  0x3f   :  { %714 = vmatpush1.bf16.msra.mxu0 %v1686_v10  ;;  %v1714_v29 = vld [vmem:[#allocation5 + $0x104] ss:$8 sps:$4 sm:$0xff]   ;;  %v1716_v30 = vld [vmem:[#allocation5] ss:$8 sps:$4 sm:$0xff]   ;;  %v1718_v32 = vld [vmem:[#allocation5 + $0xf4] ss:$8 sps:$4 sm:$0xff]  }
  0x40   :  { %757 = vmatpush1.bf16.msra.mxu1 %v1687_v11  ;;  %715 = vmatprep.subr.bf16.mxu0 %v1688_v12  ;;  %v1717_v31 = vld [vmem:[#allocation5 + $0x100] ss:$8 sps:$4 sm:$0xff]   ;;  %v1720_v33 = vld [vmem:[#allocation5 + $0x1f4] ss:$8 sps:$4 sm:$0xff]   ;;  %v1722_v34 = vld [vmem:[#allocation5 + $0xf0] ss:$8 sps:$4 sm:$0xff]  }
  0x41   :  { %758 = vmatprep.subr.bf16.mxu1 %v1690_v13  ;;  %v1723_v35 = vld [vmem:[#allocation5 + $0x1f0] ss:$8 sps:$4 sm:$0xff]   ;;  %v1724_v36 = vld [vmem:[#allocation5 + $0xe4] ss:$8 sps:$4 sm:$0xff]   ;;  %v1728_v38 = vld [vmem:[#allocation5 + $0xe0] ss:$8 sps:$4 sm:$0xff]  }
  0x42   :  { %v1726_v37 = vld [vmem:[#allocation5 + $0x1e4] ss:$8 sps:$4 sm:$0xff]   ;;  %v1729_v39 = vld [vmem:[#allocation5 + $0x1e0] ss:$8 sps:$4 sm:$0xff]   ;;  %v1730_v40 = vld [vmem:[#allocation5 + $0xd4] ss:$8 sps:$4 sm:$0xff]  }
  0x43   :  { %716 = vmatpush1.bf16.msra.mxu0 %v1692_v14  ;;  %v1732_v41 = vld [vmem:[#allocation5 + $0x1d4] ss:$8 sps:$4 sm:$0xff]   ;;  %v1734_v42 = vld [vmem:[#allocation5 + $0xd0] ss:$8 sps:$4 sm:$0xff]   ;;  %v1736_v44 = vld [vmem:[#allocation5 + $0xc4] ss:$8 sps:$4 sm:$0xff]  }
  0x44   :  { %759 = vmatpush1.bf16.msra.mxu1 %v1693_v15  ;;  %717 = vmatprep.subr.bf16.mxu0 %v1694_v16  ;;  %v1735_v43 = vld [vmem:[#allocation5 + $0x1d0] ss:$8 sps:$4 sm:$0xff]   ;;  %v1738_v45 = vld [vmem:[#allocation5 + $0x1c4] ss:$8 sps:$4 sm:$0xff]   ;;  %v1740_v46 = vld [vmem:[#allocation5 + $0xc0] ss:$8 sps:$4 sm:$0xff]  }
  0x45   :  { %760 = vmatprep.subr.bf16.mxu1 %v1696_v17  ;;  %v1741_v47 = vld [vmem:[#allocation5 + $0x1c0] ss:$8 sps:$4 sm:$0xff]   ;;  %v1742_v48 = vld [vmem:[#allocation5 + $0xb4] ss:$8 sps:$4 sm:$0xff]   ;;  %v1746_v52 = vld [vmem:[#allocation5 + $0xb0] ss:$8 sps:$4 sm:$0xff]  }
  0x46   :  { %v1768_v49 = vld [vmem:[#allocation2 + $0x4] ss:$28 sps:$4 sm:$0xff]   ;;  %v1744_v50 = vld [vmem:[#allocation5 + $0x1b4] ss:$8 sps:$4 sm:$0xff]   ;;  %v1747_v53 = vld [vmem:[#allocation5 + $0x1b0] ss:$8 sps:$4 sm:$0xff]  }
  0x47   :  { %718 = vmatpush1.bf16.msra.mxu0 %v1698_v18  ;;  %v1771_v51 = vld [vmem:[#allocation2 + $0xc] ss:$28 sps:$4 sm:$0xff]   ;;  %741 = vmatprep.mubr.bf16.mxu0 %v1768_v49  ;;  %v1748_v54 = vld [vmem:[#allocation5 + $0xa4] ss:$8 sps:$4 sm:$0xff]   ;;  %v1752_v56 = vld [vmem:[#allocation5 + $0xa0] ss:$8 sps:$4 sm:$0xff]  }
  0x48   :  { %761 = vmatpush1.bf16.msra.mxu1 %v1699_v19  ;;  %719 = vmatprep.subr.bf16.mxu0 %v1700_v20  ;;  %v1750_v55 = vld [vmem:[#allocation5 + $0x1a4] ss:$8 sps:$4 sm:$0xff]   ;;  %v1753_v57 = vld [vmem:[#allocation5 + $0x1a0] ss:$8 sps:$4 sm:$0xff]   ;;  %v1754_v58 = vld [vmem:[#allocation5 + $0x94] ss:$8 sps:$4 sm:$0xff]  }
  0x49   :  { %762 = vmatprep.subr.bf16.mxu1 %v1702_v21  ;;  %784 = vmatprep.mubr.bf16.mxu1 %v1771_v51  ;;  %v1756_v59 = vld [vmem:[#allocation5 + $0x194] ss:$8 sps:$4 sm:$0xff]   ;;  %v1758_v60 = vld [vmem:[#allocation5 + $0x90] ss:$8 sps:$4 sm:$0xff]   ;;  %v1760_v62 = vld [vmem:[#allocation5 + $0x84] ss:$8 sps:$4 sm:$0xff]  }
  0x4a   :  { %v1759_v61 = vld [vmem:[#allocation5 + $0x190] ss:$8 sps:$4 sm:$0xff]   ;;  %v1762_v63 = vld [vmem:[#allocation5 + $0x184] ss:$8 sps:$4 sm:$0xff]   ;;  %v1764_v0 = vld [vmem:[#allocation5 + $0x80] ss:$8 sps:$4 sm:$0xff]  }
  0x4b   :  { %720 = vmatpush1.bf16.msra.mxu0 %v1704_v22  ;;  %v1765_v1 = vld [vmem:[#allocation5 + $0x180] ss:$8 sps:$4 sm:$0xff]   ;;  %v1774_v2 = vld [vmem:[#allocation5 + $0x274] ss:$8 sps:$4 sm:$0xff]   ;;  %v1769_v4 = vld [vmem:[#allocation2 + $0x8] ss:$28 sps:$4 sm:$0xff]  }
  0x4c   :  { %763 = vmatpush1.bf16.msra.mxu1 %v1705_v23  ;;  %721 = vmatprep.subr.bf16.mxu0 %v1706_v24  ;;  %v1766_v3 = vld [vmem:[#allocation2] ss:$28 sps:$4 sm:$0xff]   ;;  %v1772_v5 = vld [vmem:[#allocation5 + $0x270] ss:$8 sps:$4 sm:$0xff]   ;;  %v1780_v10 = vld [vmem:[#allocation5 + $0x254] ss:$8 sps:$4 sm:$0xff]  }
  0x4d   :  { %764 = vmatprep.subr.bf16.mxu1 %v1708_v25  ;;  %v1777_v6 = vld [vmem:[#allocation5 + $0x264] ss:$8 sps:$4 sm:$0xff]   ;;  %v1817_v7 = vld [vmem:[#allocation5 + $0x300] ss:$8 sps:$4 sm:$0xff]   ;;  %v1778_v12 = vld [vmem:[#allocation5 + $0x250] ss:$8 sps:$4 sm:$0xff]  }
  0x4e   :  { %v1819_v8 = vld [vmem:[#allocation5 + $0x304] ss:$8 sps:$4 sm:$0xff]   ;;  %v1775_v9 = vld [vmem:[#allocation5 + $0x260] ss:$8 sps:$4 sm:$0xff]   ;;  %v2009_v13 = vmov 0   ;;  %vm705_vm0 = vcmask 130048  }
  0x4f   :  { %722 = vmatpush1.bf16.msra.mxu0 %v1710_v26  ;;  %v1823_v11 = vld [vmem:[#allocation2 + $0x18] ss:$28 sps:$4 sm:$0xff]   ;;  %v1783_v15 = vld [vmem:[#allocation5 + $0x244] ss:$8 sps:$4 sm:$0xff]   ;;  %v1784_v18 = vld [vmem:[#allocation5 + $0x230] ss:$8 sps:$4 sm:$0xff]  }
  0x50   :  { %765 = vmatpush1.bf16.msra.mxu1 %v1711_v27  ;;  %723 = vmatprep.subr.bf16.mxu0 %v1712_v28  ;;  %v1826_v14 = vld [vmem:[#allocation2 + $0x14] ss:$28 sps:$4 sm:$0xff]   ;;  %v1781_v16 = vld [vmem:[#allocation5 + $0x240] ss:$8 sps:$4 sm:$0xff]   ;;  %v1789_v19 = vld [vmem:[#allocation5 + $0x224] ss:$8 sps:$4 sm:$0xff]  }
  0x51   :  { %766 = vmatprep.subr.bf16.mxu1 %v1714_v29  ;;  %v1786_v17 = vld [vmem:[#allocation5 + $0x234] ss:$8 sps:$4 sm:$0xff]   ;;  %v1787_v20 = vld [vmem:[#allocation5 + $0x220] ss:$8 sps:$4 sm:$0xff]   ;;  %v1790_v22 = vld [vmem:[#allocation5 + $0x210] ss:$8 sps:$4 sm:$0xff]  }
  0x52   :  { %v1792_v21 = vld [vmem:[#allocation5 + $0x214] ss:$8 sps:$4 sm:$0xff]   ;;  %v1795_v23 = vld [vmem:[#allocation5 + $0x204] ss:$8 sps:$4 sm:$0xff]   ;;  %v1793_v24 = vld [vmem:[#allocation5 + $0x200] ss:$8 sps:$4 sm:$0xff]  }
  0x53   :  { %724 = vmatpush1.bf16.msra.mxu0 %v1716_v30  ;;  %v1798_v25 = vld [vmem:[#allocation5 + $0x2f4] ss:$8 sps:$4 sm:$0xff]   ;;  %v1796_v26 = vld [vmem:[#allocation5 + $0x2f0] ss:$8 sps:$4 sm:$0xff]   ;;  %v1801_v27 = vld [vmem:[#allocation5 + $0x2e4] ss:$8 sps:$4 sm:$0xff]  }
  0x54   :  { %767 = vmatpush1.bf16.msra.mxu1 %v1717_v31  ;;  %725 = vmatprep.subr.bf16.mxu0 %v1718_v32  ;;  %v1799_v28 = vld [vmem:[#allocation5 + $0x2e0] ss:$8 sps:$4 sm:$0xff]   ;;  %v1804_v29 = vld [vmem:[#allocation5 + $0x2d4] ss:$8 sps:$4 sm:$0xff]   ;;  %v1802_v30 = vld [vmem:[#allocation5 + $0x2d0] ss:$8 sps:$4 sm:$0xff]  }
  0x55   :  { %768 = vmatprep.subr.bf16.mxu1 %v1720_v33  ;;  %v1807_v31 = vld [vmem:[#allocation5 + $0x2c4] ss:$8 sps:$4 sm:$0xff]   ;;  %v1805_v32 = vld [vmem:[#allocation5 + $0x2c0] ss:$8 sps:$4 sm:$0xff]   ;;  %v1810_v33 = vld [vmem:[#allocation5 + $0x2b4] ss:$8 sps:$4 sm:$0xff]  }
  0x56   :  { %v2082_v49 = vld [vmem:[#allocation7 + $0x40] ss:$8 sps:$4 sm:$0xff]   ;;  %v2090_v51 = vld [vmem:[#allocation7 + $0x30] ss:$8 sps:$4 sm:$0xff]   ;;  %s2010_s2 = smov [#allocation10]  }
  0x57   :  { %726 = vmatpush2.bf16.msra.mxu0 %v1722_v34  ;;  %v1808_v34 = vld [vmem:[#allocation5 + $0x2b0] ss:$8 sps:$4 sm:$0xff]   ;;  %s1459_s3 = sshll.u32 %s2010_s2, 4  ;;  %s1460_s3 = int_to_ptr.vmem [resolvable:$true] %s1459_s3 }
  0x58   :  { %769 = vmatpush2.bf16.msra.mxu1 %v1723_v35  ;;  %727 = vmatprep.subr.bf16.mxu0 %v1724_v36  ;;  %v1813_v35 = vld [vmem:[#allocation5 + $0x2a4] ss:$8 sps:$4 sm:$0xff]   ;;  %v1811_v36 = vld [vmem:[#allocation5 + $0x2a0] ss:$8 sps:$4 sm:$0xff]   ;;  %s1971_s13 = scalar_lea.vmem %s1460_s3, 128  ;;  %p1976_p7 = scmp.lt.s32.totalorder %s1460_s3, %s1460_s3 }
  0x59   :  { %770 = vmatprep.subr.bf16.mxu1 %v1726_v37  ;;  %v1816_v37 = vld [vmem:[#allocation5 + $0x294] ss:$8 sps:$4 sm:$0xff]   ;;  %p1972_p6 = scmp.ne.s32.totalorder %s1460_s3, %s1971_s13  ;;  %p1977_p8 = scmp.lt.s32.totalorder %s1971_s13, %s1971_s13 }
  0x5b   :  { %728 = vmatpush2.bf16.msra.mxu0 %v1728_v38  ;;  %v1814_v38 = vld [vmem:[#allocation5 + $0x290] ss:$8 sps:$4 sm:$0xff]   ;;  %p1978_p9 = por %p1977_p8, %p1976_p7 }
  0x5c   :  { %771 = vmatpush2.bf16.msra.mxu1 %v1729_v39  ;;  %729 = vmatprep.subr.bf16.mxu0 %v1730_v40  ;;  %v1822_v39 = vld [vmem:[#allocation5 + $0x284] ss:$8 sps:$4 sm:$0xff]   ;;  %v1820_v40 = vld [vmem:[#allocation5 + $0x280] ss:$8 sps:$4 sm:$0xff]  }
  0x5d   :  { %772 = vmatprep.subr.bf16.mxu1 %v1732_v41  ;;  %v1824_v41 = vld [vmem:[#allocation2 + $0x10] ss:$28 sps:$4 sm:$0xff]   ;;  %p1979_p10 = pnand %p1978_p9, %p1972_p6 }
  0x5f   :  { %730 = vmatpush2.bf16.msra.mxu0 %v1734_v42  ;;  %v2057_v42 = vld [vmem:[#allocation7 + $0x74] ss:$8 sps:$4 sm:$0xff]  }
  0x60   :  { %773 = vmatpush2.bf16.msra.mxu1 %v1735_v43  ;;  %731 = vmatprep.subr.bf16.mxu0 %v1736_v44  ;;  %v2059_v43 = vld [vmem:[#allocation7 + $0x70] ss:$8 sps:$4 sm:$0xff]   ;;  %v2061_v44 = vld [vmem:[#allocation7 + $0x64] ss:$8 sps:$4 sm:$0xff]  }
  0x61   :  { %774 = vmatprep.subr.bf16.mxu1 %v1738_v45  ;;  %v2066_v45 = vld [vmem:[#allocation7 + $0x60] ss:$8 sps:$4 sm:$0xff]  }
  0x63   :  { %732 = vmatpush2.bf16.msra.mxu0 %v1740_v46  ;;  %v2070_v46 = vld [vmem:[#allocation7 + $0x54] ss:$8 sps:$4 sm:$0xff]  }
  0x64   :  { %775 = vmatpush2.bf16.msra.mxu1 %v1741_v47  ;;  %733 = vmatprep.subr.bf16.mxu0 %v1742_v48  ;;  %v2074_v47 = vld [vmem:[#allocation7 + $0x50] ss:$8 sps:$4 sm:$0xff]   ;;  %v2078_v48 = vld [vmem:[#allocation7 + $0x44] ss:$8 sps:$4 sm:$0xff]  }
  0x65   :  { %776 = vmatprep.subr.bf16.mxu1 %v1744_v50  ;;  %v2086_v50 = vld [vmem:[#allocation7 + $0x34] ss:$8 sps:$4 sm:$0xff]  }
  0x67   :  { %734 = vmatpush2.bf16.msra.mxu0 %v1746_v52  ;;  %v2094_v52 = vld [vmem:[#allocation7 + $0x24] ss:$8 sps:$4 sm:$0xff]  }
  0x68   :  { %777 = vmatpush2.bf16.msra.mxu1 %v1747_v53  ;;  %735 = vmatprep.subr.bf16.mxu0 %v1748_v54  ;;  %v2098_v53 = vld [vmem:[#allocation7 + $0x20] ss:$8 sps:$4 sm:$0xff]   ;;  %v2102_v54 = vld [vmem:[#allocation7 + $0x14] ss:$8 sps:$4 sm:$0xff]  }
  0x69   :  { %778 = vmatprep.subr.bf16.mxu1 %v1750_v55  ;;  %v2106_v55 = vld [vmem:[#allocation7 + $0x10] ss:$8 sps:$4 sm:$0xff]  }
  0x6b   :  { %736 = vmatpush2.bf16.msra.mxu0 %v1752_v56  ;;  %v2110_v56 = vld [vmem:[#allocation7 + $0x4] ss:$8 sps:$4 sm:$0xff]  }
  0x6c   :  { %779 = vmatpush2.bf16.msra.mxu1 %v1753_v57  ;;  %737 = vmatprep.subr.bf16.mxu0 %v1754_v58  ;;  %v2114_v57 = vld [vmem:[#allocation7] ss:$8 sps:$4 sm:$0xff]   ;;  %v2118_v58 = vld [vmem:[#allocation7 + $0xf4] ss:$8 sps:$4 sm:$0xff]  }
  0x6d   :  { %780 = vmatprep.subr.bf16.mxu1 %v1756_v59  ;;  %v2122_v59 = vld [vmem:[#allocation7 + $0xf0] ss:$8 sps:$4 sm:$0xff]  }
  0x6f   :  { %738 = vmatpush2.bf16.msra.mxu0 %v1758_v60  ;;  %v2126_v60 = vld [vmem:[#allocation7 + $0xe4] ss:$8 sps:$4 sm:$0xff]  }
  0x70   :  { %781 = vmatpush2.bf16.msra.mxu1 %v1759_v61  ;;  %739 = vmatprep.subr.bf16.mxu0 %v1760_v62  ;;  %v2130_v61 = vld [vmem:[#allocation7 + $0xe0] ss:$8 sps:$4 sm:$0xff]   ;;  %v2134_v62 = vld [vmem:[#allocation7 + $0xd4] ss:$8 sps:$4 sm:$0xff]  }
  0x71   :  { %782 = vmatprep.subr.bf16.mxu1 %v1762_v63  ;;  %v2138_v63 = vld [vmem:[#allocation7 + $0xd0] ss:$8 sps:$4 sm:$0xff]  }
  0x73   :  { %740 = vmatpush2.bf16.msra.mxu0 %v1764_v0  ;;  %v2142_v0 = vld [vmem:[#allocation7 + $0xc4] ss:$8 sps:$4 sm:$0xff]  }
  0x74   :  { %783 = vmatpush2.bf16.msra.mxu1 %v1765_v1  ;;  %795 = vmatprep.subr.bf16.mxu0 %v1774_v2  ;;  %v2146_v1 = vld [vmem:[#allocation7 + $0xc0] ss:$8 sps:$4 sm:$0xff]   ;;  %v2150_v2 = vld [vmem:[#allocation7 + $0xb4] ss:$8 sps:$4 sm:$0xff]  }
  0x75   :  { %852 = vmatprep.subr.bf16.mxu1 %v1819_v8  ;;  %v2177_v8 = vld [vmem:[#allocation7 + $0x84] ss:$8 sps:$4 sm:$0xff]  }
  0x76   :  { %742 = vmatmul.mubr.bf16.vlgmr.msra.gmra.mxu0 %v1766_v3  ;;  %v2154_v3 = vld [vmem:[#allocation7 + $0xb0] ss:$8 sps:$4 sm:$0xff]  }
  0x77   :  { %785 = vmatmul.mubr.bf16.vlgmr.msra.gmra.mxu1 %v1769_v4  ;;  %796 = vmatpush1.bf16.msra.mxu0 %v1772_v5  ;;  %v2161_v4 = vld [vmem:[#allocation7 + $0xa4] ss:$8 sps:$4 sm:$0xff]   ;;  %v2163_v5 = vld [vmem:[#allocation7 + $0xa0] ss:$8 sps:$4 sm:$0xff]  }
  0x78   :  { %797 = vmatprep.subr.bf16.mxu0 %v1777_v6  ;;  %853 = vmatpush1.bf16.msra.mxu1 %v1817_v7  ;;  %v2169_v6 = vld [vmem:[#allocation7 + $0x94] ss:$8 sps:$4 sm:$0xff]   ;;  %v2171_v7 = vld [vmem:[#allocation7 + $0x90] ss:$8 sps:$4 sm:$0xff]  }
  0x79   :  { %870 = vmatprep.mubr.bf16.mxu1 %v2009_v13  ;;  %827 = vmatprep.mubr.bf16.mxu0 %v1826_v14 }
  0x7a   :  { %1079 = vmatprep.subr.bf16.mxu1 %v2057_v42 }
  0x7b   :  { %798 = vmatpush1.bf16.msra.mxu0 %v1775_v9  ;;  %v2179_v9 = vld [vmem:[#allocation7 + $0x80] ss:$8 sps:$4 sm:$0xff]  }
  0x7c   :  { %799 = vmatprep.subr.bf16.mxu0 %v1780_v10 }
  0x7f   :  { %1578 = vmatmul.mubr.msk.bf16.vlgmr.msra.gmra.mxu1 %vm705_vm0, %v1823_v11  ;;  %800 = vmatpush1.bf16.msra.mxu0 %v1778_v12 }
  0x80   :  { %801 = vmatprep.subr.bf16.mxu0 %v1783_v15  ;;  %1080 = vmatpush1.bf16.msra.mxu1 %v2059_v43 }
  0x81   :  { %1081 = vmatprep.subr.bf16.mxu1 %v2061_v44 }
  0x83   :  { %802 = vmatpush1.bf16.msra.mxu0 %v1781_v16 }
  0x84   :  { %803 = vmatprep.subr.bf16.mxu0 %v1786_v17  ;;  %1082 = vmatpush1.bf16.msra.mxu1 %v2066_v45 }
  0x85   :  { %1083 = vmatprep.subr.bf16.mxu1 %v2070_v46 }
  0x87   :  { %804 = vmatpush1.bf16.msra.mxu0 %v1784_v18 }
  0x88   :  { %805 = vmatprep.subr.bf16.mxu0 %v1789_v19  ;;  %1084 = vmatpush1.bf16.msra.mxu1 %v2074_v47 }
  0x89   :  { %1085 = vmatprep.subr.bf16.mxu1 %v2078_v48 }
  0x8b   :  { %806 = vmatpush1.bf16.msra.mxu0 %v1787_v20 }
  0x8c   :  { %807 = vmatprep.subr.bf16.mxu0 %v1792_v21  ;;  %1086 = vmatpush1.bf16.msra.mxu1 %v2082_v49 }
  0x8d   :  { %1087 = vmatprep.subr.bf16.mxu1 %v2086_v50 }
  0x8f   :  { %808 = vmatpush1.bf16.msra.mxu0 %v1790_v22 }
  0x90   :  { %809 = vmatprep.subr.bf16.mxu0 %v1795_v23  ;;  %1088 = vmatpush1.bf16.msra.mxu1 %v2090_v51 }
  0x91   :  { %1089 = vmatprep.subr.bf16.mxu1 %v2094_v52 }
  0x93   :  { %810 = vmatpush1.bf16.msra.mxu0 %v1793_v24 }
  0x94   :  { %811 = vmatprep.subr.bf16.mxu0 %v1798_v25  ;;  %1090 = vmatpush1.bf16.msra.mxu1 %v2098_v53 }
  0x95   :  { %1091 = vmatprep.subr.bf16.mxu1 %v2102_v54 }
  0x97   :  { %812 = vmatpush2.bf16.msra.mxu0 %v1796_v26 }
  0x98   :  { %813 = vmatprep.subr.bf16.mxu0 %v1801_v27  ;;  %1092 = vmatpush1.bf16.msra.mxu1 %v2106_v55 }
  0x99   :  { %1093 = vmatprep.subr.bf16.mxu1 %v2110_v56 }
  0x9b   :  { %814 = vmatpush2.bf16.msra.mxu0 %v1799_v28 }
  0x9c   :  { %815 = vmatprep.subr.bf16.mxu0 %v1804_v29  ;;  %1094 = vmatpush1.bf16.msra.mxu1 %v2114_v57 }
  0x9d   :  { %1095 = vmatprep.subr.bf16.mxu1 %v2118_v58 }
  0x9f   :  { %816 = vmatpush2.bf16.msra.mxu0 %v1802_v30 }
  0xa0   :  { %817 = vmatprep.subr.bf16.mxu0 %v1807_v31  ;;  %1096 = vmatpush2.bf16.msra.mxu1 %v2122_v59 }
  0xa1   :  { %1097 = vmatprep.subr.bf16.mxu1 %v2126_v60 }
  0xa3   :  { %818 = vmatpush2.bf16.msra.mxu0 %v1805_v32 }
  0xa4   :  { %819 = vmatprep.subr.bf16.mxu0 %v1810_v33  ;;  %1098 = vmatpush2.bf16.msra.mxu1 %v2130_v61 }
  0xa5   :  { %1099 = vmatprep.subr.bf16.mxu1 %v2134_v62 }
  0xa7   :  { %820 = vmatpush2.bf16.msra.mxu0 %v1808_v34 }
  0xa8   :  { %821 = vmatprep.subr.bf16.mxu0 %v1813_v35  ;;  %1100 = vmatpush2.bf16.msra.mxu1 %v2138_v63 }
  0xa9   :  { %1101 = vmatprep.subr.bf16.mxu1 %v2142_v0 }
  0xab   :  { %822 = vmatpush2.bf16.msra.mxu0 %v1811_v36 }
  0xac   :  { %823 = vmatprep.subr.bf16.mxu0 %v1816_v37  ;;  %1102 = vmatpush2.bf16.msra.mxu1 %v2146_v1 }
  0xad   :  { %1103 = vmatprep.subr.bf16.mxu1 %v2150_v2 }
  0xaf   :  { %824 = vmatpush2.bf16.msra.mxu0 %v1814_v38 }
  0xb0   :  { %825 = vmatprep.subr.bf16.mxu0 %v1822_v39  ;;  %1104 = vmatpush2.bf16.msra.mxu1 %v2154_v3 }
  0xb1   :  { %1105 = vmatprep.subr.bf16.mxu1 %v2161_v4 }
  0xb3   :  { %826 = vmatpush2.bf16.msra.mxu0 %v1820_v40 }
  0xb4   :  { %1128 = vmatprep.subr.bf16.mxu0 %v2057_v42  ;;  %1106 = vmatpush2.bf16.msra.mxu1 %v2163_v5 }
  0xb5   :  { %1107 = vmatprep.subr.bf16.mxu1 %v2169_v6 }
  0xb6   :  { %828 = vmatmul.mubr.bf16.vlgmr.msra.gmra.mxu0 %v1824_v41 }
  0xb7   :  { %1129 = vmatpush1.bf16.msra.mxu0 %v2059_v43 }
  0xb8   :  { %1130 = vmatprep.subr.bf16.mxu0 %v2061_v44  ;;  %1108 = vmatpush2.bf16.msra.mxu1 %v2171_v7 }
  0xb9   :  { %1109 = vmatprep.subr.bf16.mxu1 %v2177_v8 }
  0xbb   :  { %1131 = vmatpush1.bf16.msra.mxu0 %v2066_v45 }
  0xbc   :  { %1132 = vmatprep.subr.bf16.mxu0 %v2070_v46  ;;  %1110 = vmatpush2.bf16.msra.mxu1 %v2179_v9 }
  0xbd   :  { %1177 = vmatprep.subr.bf16.mxu1 %v2057_v42 }
  0xbf   :  { %1133 = vmatpush1.bf16.msra.mxu0 %v2074_v47 }
  0xc0   :  { %1134 = vmatprep.subr.bf16.mxu0 %v2078_v48 }
  0xc3   :  { %1135 = vmatpush1.bf16.msra.mxu0 %v2082_v49 }
  0xc4   :  { %1136 = vmatprep.subr.bf16.mxu0 %v2086_v50 }
  0xc7   :  { %1137 = vmatpush1.bf16.msra.mxu0 %v2090_v51 }
  0xc8   :  { %1138 = vmatprep.subr.bf16.mxu0 %v2094_v52 }
  0xcb   :  { %1139 = vmatpush1.bf16.msra.mxu0 %v2098_v53 }
  0xcc   :  { %1140 = vmatprep.subr.bf16.mxu0 %v2102_v54 }
  0xcf   :  { %1141 = vmatpush1.bf16.msra.mxu0 %v2106_v55 }
  0xd0   :  { %1142 = vmatprep.subr.bf16.mxu0 %v2110_v56 }
  0xd3   :  { %1143 = vmatpush1.bf16.msra.mxu0 %v2114_v57 }
  0xd4   :  { %1144 = vmatprep.subr.bf16.mxu0 %v2118_v58 }
  0xd7   :  { %1145 = vmatpush2.bf16.msra.mxu0 %v2122_v59 }
  0xd8   :  { %1146 = vmatprep.subr.bf16.mxu0 %v2126_v60 }
  0xdb   :  { %1147 = vmatpush2.bf16.msra.mxu0 %v2130_v61 }
  0xdc   :  { %1148 = vmatprep.subr.bf16.mxu0 %v2134_v62 }
  0xdf   :  { %1149 = vmatpush2.bf16.msra.mxu0 %v2138_v63 }
  0xe0   :  { %1150 = vmatprep.subr.bf16.mxu0 %v2142_v0 }
  0xe3   :  { %1151 = vmatpush2.bf16.msra.mxu0 %v2146_v1 }
  0xe4   :  { %1152 = vmatprep.subr.bf16.mxu0 %v2150_v2 }
  0xe7   :  { %1153 = vmatpush2.bf16.msra.mxu0 %v2154_v3 }
  0xe8   :  { %1154 = vmatprep.subr.bf16.mxu0 %v2161_v4 }
  0xeb   :  { %1155 = vmatpush2.bf16.msra.mxu0 %v2163_v5 }
  0xec   :  { %1156 = vmatprep.subr.bf16.mxu0 %v2169_v6 }
  0xef   :  { %1157 = vmatpush2.bf16.msra.mxu0 %v2171_v7 }
  0xf0   :  { %1158 = vmatprep.subr.bf16.mxu0 %v2177_v8 }
  0xf3   :  { %1159 = vmatpush2.bf16.msra.mxu0 %v2179_v9 }
  0xf4   :  { %1226 = vmatprep.subr.bf16.mxu0 %v2057_v42 }
 0x136   :  { %v743_v11 = vpop.f32.mrf.mxu0 }
 0x137   :  { %v786_v10 = vpop.f32.mrf.mxu1 }
 0x138   :  { %v745_v13 = vpop.f32.mrf.mxu0  ;;  %v787_v24 = vadd.f32 %v786_v10, %v743_v11 }
 0x139   :  { %v788_v12 = vpop.f32.mrf.mxu1 }
 0x13a   :  { %v747_v15 = vpop.f32.mrf.mxu0  ;;  %v789_v22 = vadd.f32 %v788_v12, %v745_v13 }
 0x13b   :  { %v790_v14 = vpop.f32.mrf.mxu1 }
 0x13c   :  { %v749_v18 = vpop.f32.mrf.mxu0  ;;  %v791_v23 = vadd.f32 %v790_v14, %v747_v15 }
 0x13d   :  { %v792_v16 = vpop.f32.mrf.mxu1 }
 0x13e   :  { %v793_v27 = vadd.f32 %v792_v16, %v749_v18 }
 0x13f   :  { %v872_v17 = vpop.f32.mrf.mxu1 }
 0x141   :  { %v874_v19 = vpop.f32.mrf.mxu1 }
 0x143   :  { %v876_v25 = vpop.f32.mrf.mxu1 }
 0x145   :  { %v878_v33 = vpop.f32.mrf.mxu1 }
 0x176   :  { %v829_v20 = vpop.f32.mrf.mxu0 }
 0x177   :  { %v830_v30 = vadd.f32 %v829_v20, %v787_v24  ;;  %v1889_v24 = vld [vmem:[#allocation8 + $0x40] sm:$0xff]  }
 0x178   :  { %v831_v21 = vpop.f32.mrf.mxu0 }
 0x179   :  { %v832_v28 = vadd.f32 %v831_v21, %v789_v22  ;;  %v873_v37 = vadd.f32 %v872_v17, %v830_v30  ;;  %v1886_v21 = vld [vmem:[#allocation8 + $0x10] sm:$0xff]   ;;  %v1887_v22 = vld [vmem:[#allocation8 + $0x48] sm:$0xff]  }
 0x17a   :  { %v833_v26 = vpop.f32.mrf.mxu0 }
 0x17b   :  { %v834_v29 = vadd.f32 %v833_v26, %v791_v23  ;;  %v875_v35 = vadd.f32 %v874_v19, %v832_v28  ;;  %v2224_v13 = vadd.f32 1.0, %v873_v37  ;;  %v1888_v23 = vld [vmem:[#allocation8 + $0x8] sm:$0xff]  }
 0x17c   :  { %v835_v31 = vpop.f32.mrf.mxu0 }
 0x17d   :  { %v836_v32 = vadd.f32 %v835_v31, %v793_v27  ;;  %v877_v34 = vadd.f32 %v876_v25, %v834_v29  ;;  %v2220_v11 = vadd.f32 1.0, %v875_v35  ;;  %v1890_v25 = vld [vmem:[#allocation8] sm:$0xff]  }
 0x17f   :  { %v879_v36 = vadd.f32 %v878_v33, %v836_v32  ;;  %v885_v39 = vpack.c.bf16 %v877_v34, %v873_v37  ;;  %v2218_v42 = vadd.f32 1.0, %v877_v34 }
 0x181   :  { %v886_v38 = vpack.c.bf16 %v879_v36, %v875_v35  ;;  %v2222_v12 = vadd.f32 1.0, %v879_v36 }
 0x183   :  { %1111 = vmatprep.mubr.bf16.mxu1 %v886_v38 }
 0x184   :  { %1112 = vmatmul.mubr.bf16.vlgmr.msra.gmra.mxu1 %v885_v39 }
 0x185   :  { %1178 = vmatpush1.bf16.msra.mxu1 %v2059_v43 }
 0x186   :  { %1179 = vmatprep.subr.bf16.mxu1 %v2061_v44 }
 0x189   :  { %1180 = vmatpush1.bf16.msra.mxu1 %v2066_v45 }
 0x18a   :  { %1181 = vmatprep.subr.bf16.mxu1 %v2070_v46 }
 0x18d   :  { %1182 = vmatpush1.bf16.msra.mxu1 %v2074_v47 }
 0x18e   :  { %1183 = vmatprep.subr.bf16.mxu1 %v2078_v48 }
 0x191   :  { %1184 = vmatpush1.bf16.msra.mxu1 %v2082_v49 }
 0x192   :  { %1185 = vmatprep.subr.bf16.mxu1 %v2086_v50 }
 0x195   :  { %1186 = vmatpush1.bf16.msra.mxu1 %v2090_v51 }
 0x196   :  { %1187 = vmatprep.subr.bf16.mxu1 %v2094_v52 }
 0x199   :  { %1188 = vmatpush1.bf16.msra.mxu1 %v2098_v53 }
 0x19a   :  { %1189 = vmatprep.subr.bf16.mxu1 %v2102_v54 }
 0x19d   :  { %1190 = vmatpush1.bf16.msra.mxu1 %v2106_v55 }
 0x19e   :  { %1191 = vmatprep.subr.bf16.mxu1 %v2110_v56 }
 0x1a1   :  { %1192 = vmatpush1.bf16.msra.mxu1 %v2114_v57 }
 0x1a2   :  { %1193 = vmatprep.subr.bf16.mxu1 %v2118_v58 }
 0x1a5   :  { %1194 = vmatpush2.bf16.msra.mxu1 %v2122_v59 }
 0x1a6   :  { %1195 = vmatprep.subr.bf16.mxu1 %v2126_v60 }
 0x1a9   :  { %1196 = vmatpush2.bf16.msra.mxu1 %v2130_v61 }
 0x1aa   :  { %1197 = vmatprep.subr.bf16.mxu1 %v2134_v62 }
 0x1ad   :  { %1198 = vmatpush2.bf16.msra.mxu1 %v2138_v63 }
 0x1ae   :  { %1199 = vmatprep.subr.bf16.mxu1 %v2142_v0 }
 0x1b1   :  { %1200 = vmatpush2.bf16.msra.mxu1 %v2146_v1 }
 0x1b2   :  { %1201 = vmatprep.subr.bf16.mxu1 %v2150_v2 }
 0x1b5   :  { %1202 = vmatpush2.bf16.msra.mxu1 %v2154_v3 }
 0x1b6   :  { %1203 = vmatprep.subr.bf16.mxu1 %v2161_v4 }
 0x1b9   :  { %1204 = vmatpush2.bf16.msra.mxu1 %v2163_v5 }
 0x1ba   :  { %1205 = vmatprep.subr.bf16.mxu1 %v2169_v6 }
 0x1bd   :  { %1206 = vmatpush2.bf16.msra.mxu1 %v2171_v7 }
 0x1be   :  { %1207 = vmatprep.subr.bf16.mxu1 %v2177_v8 }
 0x1c1   :  { %1208 = vmatpush2.bf16.msra.mxu1 %v2179_v9 }
 0x244   :  { %v1113_v40 = vpop.f32.mrf.mxu1 }
 0x245   :  { %v1122_v18 = vmul.f32 %v1113_v40, %v2224_v13 }
 0x246   :  { %v1115_v41 = vpop.f32.mrf.mxu1 }
 0x247   :  { %v1123_v16 = vmul.f32 %v1115_v41, %v2220_v11 }
 0x248   :  { %v1117_v10 = vpop.f32.mrf.mxu1 }
 0x249   :  { %v1124_v14 = vmul.f32 %v1117_v10, %v2218_v42 }
 0x24a   :  { %v1119_v15 = vpop.f32.mrf.mxu1 }
 0x24b   :  { %v1125_v17 = vmul.f32 %v1119_v15, %v2222_v12  ;;  %v1126_v20 = vpack.c.bf16 %v1124_v14, %v1122_v18 }
 0x24d   :  { %v1127_v19 = vpack.c.bf16 %v1125_v17, %v1123_v16 }
 0x24f   :  { %1160 = vmatprep.mubr.bf16.mxu0 %v1127_v19 }
 0x250   :  { %1161 = vmatmul.mubr.bf16.vlgmr.msra.gmra.mxu0 %v1126_v20 }
 0x251   :  { %1227 = vmatpush1.bf16.msra.mxu0 %v2059_v43 }
 0x252   :  { %1228 = vmatprep.subr.bf16.mxu0 %v2061_v44 }
 0x255   :  { %1229 = vmatpush1.bf16.msra.mxu0 %v2066_v45 }
 0x256   :  { %1230 = vmatprep.subr.bf16.mxu0 %v2070_v46 }
 0x259   :  { %1231 = vmatpush1.bf16.msra.mxu0 %v2074_v47 }
 0x25a   :  { %1232 = vmatprep.subr.bf16.mxu0 %v2078_v48 }
 0x25d   :  { %1233 = vmatpush1.bf16.msra.mxu0 %v2082_v49 }
 0x25e   :  { %1234 = vmatprep.subr.bf16.mxu0 %v2086_v50 }
 0x261   :  { %1235 = vmatpush1.bf16.msra.mxu0 %v2090_v51 }
 0x262   :  { %1236 = vmatprep.subr.bf16.mxu0 %v2094_v52 }
 0x265   :  { %1237 = vmatpush1.bf16.msra.mxu0 %v2098_v53  ;;  %v1875_v53 = vld [vmem:[#allocation8 + $0x78] sm:$0xff]  }
 0x266   :  { %1238 = vmatprep.subr.bf16.mxu0 %v2102_v54  ;;  %v1876_v54 = vld [vmem:[#allocation8 + $0x38] sm:$0xff]   ;;  %1636 = vmatprep.subr.bf16.mxu1 %v1875_v53 }
 0x269   :  { %1239 = vmatpush1.bf16.msra.mxu0 %v2106_v55  ;;  %v1877_v55 = vld [vmem:[#allocation8 + $0x70] sm:$0xff]  }
 0x26a   :  { %1240 = vmatprep.subr.bf16.mxu0 %v2110_v56  ;;  %v1878_v56 = vld [vmem:[#allocation8 + $0x30] sm:$0xff]  }
 0x26d   :  { %1241 = vmatpush1.bf16.msra.mxu0 %v2114_v57  ;;  %v1879_v57 = vld [vmem:[#allocation8 + $0x68] sm:$0xff]  }
 0x26e   :  { %1242 = vmatprep.subr.bf16.mxu0 %v2118_v58  ;;  %v1880_v58 = vld [vmem:[#allocation8 + $0x28] sm:$0xff]  }
 0x271   :  { %1243 = vmatpush2.bf16.msra.mxu0 %v2122_v59  ;;  %v1881_v59 = vld [vmem:[#allocation8 + $0x60] sm:$0xff]  }
 0x272   :  { %1244 = vmatprep.subr.bf16.mxu0 %v2126_v60  ;;  %v1882_v60 = vld [vmem:[#allocation8 + $0x20] sm:$0xff]  }
 0x275   :  { %1245 = vmatpush2.bf16.msra.mxu0 %v2130_v61  ;;  %v1883_v61 = vld [vmem:[#allocation8 + $0x58] sm:$0xff]  }
 0x276   :  { %1246 = vmatprep.subr.bf16.mxu0 %v2134_v62  ;;  %v1884_v62 = vld [vmem:[#allocation8 + $0x18] sm:$0xff]  }
 0x279   :  { %1247 = vmatpush2.bf16.msra.mxu0 %v2138_v63 }
 0x27a   :  { %1248 = vmatprep.subr.bf16.mxu0 %v2142_v0 }
 0x27d   :  { %1249 = vmatpush2.bf16.msra.mxu0 %v2146_v1 }
 0x27e   :  { %1250 = vmatprep.subr.bf16.mxu0 %v2150_v2 }
 0x281   :  { %1251 = vmatpush2.bf16.msra.mxu0 %v2154_v3 }
 0x282   :  { %1252 = vmatprep.subr.bf16.mxu0 %v2161_v4 }
 0x285   :  { %1253 = vmatpush2.bf16.msra.mxu0 %v2163_v5 }
 0x286   :  { %1254 = vmatprep.subr.bf16.mxu0 %v2169_v6 }
 0x289   :  { %1255 = vmatpush2.bf16.msra.mxu0 %v2171_v7 }
 0x28a   :  { %1256 = vmatprep.subr.bf16.mxu0 %v2177_v8 }
 0x28d   :  { %1257 = vmatpush2.bf16.msra.mxu0 %v2179_v9  ;;  %v1885_v9 = vld [vmem:[#allocation8 + $0x50] sm:$0xff]  }
 0x310   :  { %v1162_v43 = vpop.f32.mrf.mxu0 }
 0x311   :  { %v1171_v50 = vmul.f32 %v1162_v43, %v2224_v13 }
 0x312   :  { %v1164_v44 = vpop.f32.mrf.mxu0 }
 0x313   :  { %v1172_v48 = vmul.f32 %v1164_v44, %v2220_v11 }
 0x314   :  { %v1166_v45 = vpop.f32.mrf.mxu0 }
 0x315   :  { %v1173_v46 = vmul.f32 %v1166_v45, %v2218_v42 }
 0x316   :  { %v1168_v47 = vpop.f32.mrf.mxu0 }
 0x317   :  { %v1174_v49 = vmul.f32 %v1168_v47, %v2222_v12  ;;  %v1175_v52 = vpack.c.bf16 %v1173_v46, %v1171_v50 }
 0x319   :  { %v1176_v51 = vpack.c.bf16 %v1174_v49, %v1172_v48 }
 0x31b   :  { %1209 = vmatprep.mubr.bf16.mxu1 %v1176_v51 }
 0x31c   :  { %1210 = vmatmul.mubr.bf16.vlgmr.msra.gmra.mxu1 %v1175_v52 }
 0x31d   :  { %1637 = vmatpush3.bf16.msra.mxu1 %v1876_v54 }
 0x31e   :  { %1638 = vmatprep.subr.bf16.mxu1 %v1877_v55 }
 0x321   :  { %1639 = vmatpush3.bf16.msra.mxu1 %v1878_v56 }
 0x322   :  { %1640 = vmatprep.subr.bf16.mxu1 %v1879_v57 }
 0x325   :  { %1641 = vmatpush3.bf16.msra.mxu1 %v1880_v58 }
 0x326   :  { %1642 = vmatprep.subr.bf16.mxu1 %v1881_v59 }
 0x329   :  { %1643 = vmatpush3.bf16.msra.mxu1 %v1882_v60 }
 0x32a   :  { %1644 = vmatprep.subr.bf16.mxu1 %v1883_v61 }
 0x32d   :  { %1645 = vmatpush3.bf16.msra.mxu1 %v1884_v62 }
 0x32e   :  { %1646 = vmatprep.subr.bf16.mxu1 %v1885_v9 }
 0x331   :  { %1647 = vmatpush3.bf16.msra.mxu1 %v1886_v21 }
 0x332   :  { %1648 = vmatprep.subr.bf16.mxu1 %v1887_v22 }
 0x335   :  { %1649 = vmatpush3.bf16.msra.mxu1 %v1888_v23 }
 0x336   :  { %1650 = vmatprep.subr.bf16.mxu1 %v1889_v24 }
 0x339   :  { %1651 = vmatpush3.bf16.msra.mxu1 %v1890_v25 }
 0x3dc   :  { %v1211_v63 = vpop.f32.mrf.mxu1 }
 0x3dd   :  { %v1220_v6 = vmul.f32 %v1211_v63, %v2224_v13 }
 0x3de   :  { %v1213_v0 = vpop.f32.mrf.mxu1 }
 0x3df   :  { %v1221_v4 = vmul.f32 %v1213_v0, %v2220_v11 }
 0x3e0   :  { %v1215_v1 = vpop.f32.mrf.mxu1 }
 0x3e1   :  { %v1222_v2 = vmul.f32 %v1215_v1, %v2218_v42 }
 0x3e2   :  { %v1217_v3 = vpop.f32.mrf.mxu1 }
 0x3e3   :  { %v1223_v5 = vmul.f32 %v1217_v3, %v2222_v12  ;;  %v1224_v8 = vpack.c.bf16 %v1222_v2, %v1220_v6 }
 0x3e5   :  { %v1225_v7 = vpack.c.bf16 %v1223_v5, %v1221_v4 }
 0x3e7   :  { %1258 = vmatprep.mubr.bf16.mxu0 %v1225_v7 }
 0x3e8   :  { %1259 = vmatmul.mubr.bf16.vlgmr.msra.gmra.mxu0 %v1224_v8 }
 0x4a8   :  { %v1260_v26 = vpop.f32.mrf.mxu0 }
 0x4a9   :  { %v1269_v33 = vmul.f32 %v1260_v26, %v2224_v13 }
 0x4aa   :  { %v1262_v27 = vpop.f32.mrf.mxu0 }
 0x4ab   :  { %v1270_v31 = vmul.f32 %v1262_v27, %v2220_v11 }
 0x4ac   :  { %v1264_v28 = vpop.f32.mrf.mxu0 }
 0x4ad   :  { %v1271_v29 = vmul.f32 %v1264_v28, %v2218_v42 }
 0x4ae   :  { %v1266_v30 = vpop.f32.mrf.mxu0 }
 0x4af   :  { %v1272_v32 = vmul.f32 %v1266_v30, %v2222_v12  ;;  %v1273_v35 = vpack.c.bf16 %v1271_v29, %v1269_v33 }
 0x4b1   :  { %v1274_v34 = vpack.c.bf16 %v1272_v32, %v1270_v31 }
 0x4b3   :  { %1435 = vmatprep.mubr.bf16.mxu1 %v1274_v34 }
 0x4b4   :  { %1436 = vmatmul.mubr.bf16.vlgmr.msra.gmra.mxu1 %v1273_v35 }
 0x574   :  { %v1652_v36 = vpop.f32.mrf.mxu1 }
 0x576   :  { %v1653_v37 = vpop.f32.mrf.mxu1 }
 0x577   :  { %v1654_v40 = vadd.f32 %v1653_v37, %v1652_v36 }
 0x578   :  { %v1655_v38 = vpop.f32.mrf.mxu1 }
 0x57a   :  { %v1656_v39 = vpop.f32.mrf.mxu1 }
 0x57b   :  { %v1657_v41 = vadd.f32 %v1656_v39, %v1655_v38 }
 0x57d   :  { %v1634_v42 = vpack.c.bf16 %v1657_v41, %v1654_v40 }
 0x57f   :  { %1635 = vst [vmem:[#allocation10] sm:$0xff] %v1634_v42  }
 0x580   :  { %1982 = shalt.err (!%p1979_p10)
}
 0x581   :  { %1465 = dma.vmem_to_hbm [thread:$0]  %s1460_s3, 128, %s2283_s4, [#allocation4], %s2007_s9, %s2007_s9, %s2008_s10  }
 0x582   :  { %1997 = dma.done.wait [#allocation4], 128  }
 0x583   :  { %1998 = vsyncadd [#allocation4], 4294967168 }
 0x584   :  { %1469 = vsyncpa [#allocation3], 1 }
 0x585   :  { %1470 = vsyncpa [#allocation6], 1 }
 0x586   :  { %1471 = vsyncpa [#allocation9], 1 }
 0x587   :  { %1472 = vsyncpa [#allocation4], 1 }

</bundles_post_ra>
